<compile_context>
chip_gen: v5e
topology: v5e:2x2
jax: 0.10.0
libtpu: 0.0.40
codegen_flags: <defaults>
</compile_context>

<pallas_src>
import jax
import jax.numpy as jnp
from jax.experimental import pallas as pl
from jax.experimental.pallas import tpu as pltpu

_HP = jax.lax.Precision.HIGHEST  # used only by the pure-JAX reference

_VMEM_TILE_BUDGET = 28 * 1024 * 1024   # conservative working-set budget (all generations)
_VMEM_LIMIT_BYTES = 40 * 1024 * 1024   # > v5e 16MiB default, < v7x 64MiB physical


def _choose_batch_tile(B, L, D_in, D_embed, in_itemsize, weight_vmem_bytes):
    """Largest batch tile whose steady-state working set fits the VMEM budget,
    capped so the parallel grid stays long enough to shard across 2 TCs (v7x)."""
    # 2x double-buffered input block (native dtype) + in-kernel f32/bf16 copies and
    # attn intermediates (~8 B/elem upper bound) + mask + output double buffers.
    per_row = (2 * in_itemsize + 8) * L * D_in + 2 * L * 4 + 4 * D_embed * 4
    budget = max(_VMEM_TILE_BUDGET - 2 * weight_vmem_bytes, 1 << 20)
    tb = int(budget // max(per_row, 1))
    tb = max(8, min(tb, 256))
    tb -= tb % 8
    if B > 2 * tb:
        # keep >= ~8 grid steps so a 2-TC part can shard the "parallel" axis
        cap = max(8, ((-(-B // 8) + 7) // 8) * 8)
        tb = min(tb, cap)
    if B <= tb:
        return B   # whole batch in one full-dim tile: no padding, no partial blocks
    return tb


def _make_encoder_kernel(pooling_method, has_proj, l2norm, TB, L, D_in):
    """Builds the fused pooling + projection + l2norm kernel (static config)."""

    def kernel(*refs):
        idx = 0
        x_ref = refs[idx]; idx += 1          # (TB, L, D_in)  VMEM, native dtype
        m_ref = refs[idx]; idx += 1          # (TB, L)        VMEM, f32 (1.0 = valid)
        if pooling_method == "attn":
            w1_ref = refs[idx]; b1_ref = refs[idx + 1]      # (D_in,H) bf16, (1,H) f32
            w2_ref = refs[idx + 2]; b2_ref = refs[idx + 3]  # (1,H) f32,   (1,1) f32
            idx += 4
        if has_proj:
            w_ref = refs[idx]; b_ref = refs[idx + 1]        # (D_in,D_emb) bf16, (1,D_emb) f32
            idx += 2
        o_ref = refs[idx]                    # (TB, D_embed)  VMEM, f32

        x_in = x_ref[...]                    # native dtype (f32 or bf16)
        x = x_in.astype(jnp.float32)         # f32 for pooling/elementwise math
        m = m_ref[...]                       # (TB, L) f32

        # TODO(synk): dropout layers are inference-mode identities (train-mode RNG dropout
        # not implemented).

        if pooling_method == "first":
            emb = x[:, 0, :]
        elif pooling_method == "avg":
            cnt = jnp.sum(m, axis=1, keepdims=True)                   # (TB, 1)
            emb = jnp.sum(x * m[:, :, None], axis=1)
            emb = emb * pl.reciprocal(cnt, approx=True)               # EUP, not VALU divide
        elif pooling_method == "max":
            emb = jnp.max(jnp.where(m[:, :, None] > 0.0, x, -jnp.inf), axis=1)
        elif pooling_method == "last":
            # NOTE: a fully-masked row yields a zero embedding here (reference wraps to -1).
            last = jnp.sum(m, axis=1, keepdims=True).astype(jnp.int32) - 1   # (TB, 1)
            pos = jax.lax.broadcasted_iota(jnp.int32, (TB, L), 1)            # (TB, L)
            onehot = (pos == last).astype(jnp.float32)                       # (TB, L)
            emb = jnp.sum(x * onehot[:, :, None], axis=1)
        elif pooling_method == "attn":
            H = w1_ref.shape[1]
            # Layer 1 on the MXU: bf16 operands, f32 accumulation (no HIGHEST multi-pass).
            x_bf = x_in.astype(jnp.bfloat16).reshape(TB * L, D_in)
            h = jnp.dot(x_bf, w1_ref[...], preferred_element_type=jnp.float32)
            h = jnp.maximum(h + b1_ref[...], 0.0)                     # ReLU (dropout = id)
            h3 = h.reshape(TB, L, H)
            # Layer 2 (output dim 1) stays elementwise f32.
            logits = jnp.sum(h3 * w2_ref[...][None, :, :], axis=-1) + b2_ref[...]  # (TB, L)
            logits = jnp.where(m > 0.0, logits, -jnp.inf)
            lmax = jnp.max(logits, axis=1, keepdims=True)
            p = jnp.exp(logits - lmax)
            p = p * pl.reciprocal(jnp.sum(p, axis=1, keepdims=True), approx=True)
            emb = jnp.sum(x * p[:, :, None], axis=1)
        else:
            raise ValueError(f"unknown pooling_method {pooling_method!r}")

        if has_proj:
            emb = jnp.dot(emb.astype(jnp.bfloat16), w_ref[...],
                          preferred_element_type=jnp.float32)
            emb = emb + b_ref[...]

        if l2norm:
            ss = jnp.sum(emb * emb, axis=-1, keepdims=True)
            emb = emb * jax.lax.rsqrt(jnp.maximum(ss, 1e-24))         # == x / max(||x||,1e-12)

        o_ref[...] = emb.astype(o_ref.dtype)

    return kernel


def text_encoder_forward(inputs, masks, params, *, pooling_method, l2norm,
                         batch_tile=None):
    """Pallas equivalent of TextEncoder.forward(inputs, masks) in eval mode.

    inputs: (B, L, dim_input) float32 or bfloat16 (streamed in native dtype)
    masks:  (B, L) bool
    params: dict with optional 'w_embed' (D_in, D_embed), 'b_embed' (D_embed,)
            and, for pooling_method == 'attn':
            'w_attn1' (D_in, D_in//2), 'b_attn1' (D_in//2,),
            'w_attn2' (1, D_in//2),    'b_attn2' (1,)
    returns (B, D_embed) float32
    """
    B, L, D_in = inputs.shape
    has_proj = "w_embed" in params
    D_embed = params["w_embed"].shape[1] if has_proj else D_in
    in_itemsize = jnp.dtype(inputs.dtype).itemsize

    # Bytes of VMEM-resident weight operands (matrices stored bf16, biases f32).
    weight_bytes = 0
    if pooling_method == "attn":
        H = params["w_attn1"].shape[1]
        weight_bytes += D_in * H * 2 + H * 4 + H * 4 + 4
    if has_proj:
        weight_bytes += D_in * D_embed * 2 + D_embed * 4

    if batch_tile is None:
        TB = _choose_batch_tile(B, L, D_in, D_embed, in_itemsize, weight_bytes)
    else:
        TB = min(int(batch_tile), B)
        if TB < B:                       # keep the (8,128) sublane constraint on the output
            TB = max(8, TB - TB % 8)
    grid = pl.cdiv(B, TB)                # partial last block: OOB reads are garbage rows,
                                         # OOB writes are discarded (no pad+concat copy).

    m = masks.astype(jnp.float32)

    operands = [inputs, m]
    in_specs = [
        pl.BlockSpec((TB, L, D_in), lambda i: (i, 0, 0)),   # dense batch tile, native dtype
        pl.BlockSpec((TB, L), lambda i: (i, 0)),
    ]
    if pooling_method == "attn":
        H = params["w_attn1"].shape[1]
        operands += [
            params["w_attn1"].astype(jnp.bfloat16),
            params["b_attn1"].astype(jnp.float32).reshape(1, H),
            params["w_attn2"].astype(jnp.float32).reshape(1, H),
            params["b_attn2"].astype(jnp.float32).reshape(1, 1),
        ]
        in_specs += [
            pl.BlockSpec((D_in, H), lambda i: (0, 0)),      # VMEM-resident weights
            pl.BlockSpec((1, H), lambda i: (0, 0)),
            pl.BlockSpec((1, H), lambda i: (0, 0)),
            pl.BlockSpec((1, 1), lambda i: (0, 0)),
        ]
    if has_proj:
        operands += [
            params["w_embed"].astype(jnp.bfloat16),
            params["b_embed"].astype(jnp.float32).reshape(1, D_embed),
        ]
        in_specs += [
            pl.BlockSpec((D_in, D_embed), lambda i: (0, 0)),
            pl.BlockSpec((1, D_embed), lambda i: (0, 0)),
        ]

    kernel = _make_encoder_kernel(pooling_method, has_proj, l2norm, TB, L, D_in)

    # Advisory cost estimate for XLA's scheduler.
    flops = 4 * B * L * D_in
    if pooling_method == "attn":
        H = params["w_attn1"].shape[1]
        flops += 2 * B * L * D_in * H + 2 * B * L * H
    if has_proj:
        flops += 2 * B * D_in * D_embed
    transcendentals = (B * L if pooling_method == "attn" else 0) + (B if l2norm else 0)
    bytes_accessed = (B * L * D_in * in_itemsize + B * L * 4
                      + weight_bytes + B * D_embed * 4)

    out = pl.pallas_call(
        kernel,
        out_shape=jax.ShapeDtypeStruct((B, D_embed), jnp.float32),
        grid_spec=pltpu.PrefetchScalarGridSpec(
            num_scalar_prefetch=0,
            grid=(grid,),
            in_specs=in_specs,
            out_specs=pl.BlockSpec((TB, D_embed), lambda i: (i, 0)),
        ),
        compiler_params=pltpu.CompilerParams(
            # batch tiles are independent -> shardable across TCs (v7x); no-op on v5e/v6e
            dimension_semantics=("parallel",),
            vmem_limit_bytes=_VMEM_LIMIT_BYTES,
        ),
        cost_estimate=pl.CostEstimate(flops=int(flops),
                                      transcendentals=int(transcendentals),
                                      bytes_accessed=int(bytes_accessed)),
    )(*operands)

    return out


def _reference(inputs, masks, params, pooling_method, l2norm):
    """Pure-JAX f32 reference mirroring TextEncoder.forward (eval mode)."""
    x = inputs.astype(jnp.float32)
    m = masks.astype(jnp.float32)
    if pooling_method == "first":
        emb = x[:, 0]
    elif pooling_method == "avg":
        emb = jnp.sum(x * m[:, :, None], axis=1) / jnp.sum(m, axis=1, keepdims=True)
    elif pooling_method == "max":
        emb = jnp.max(jnp.where(m[:, :, None] > 0, x, -jnp.inf), axis=1)
    elif pooling_method == "last":
        idx = (jnp.sum(m, axis=1).astype(jnp.int32) - 1)[:, None, None]
        emb = jnp.take_along_axis(x, idx, axis=1)[:, 0]
    elif pooling_method == "attn":
        h = jax.nn.relu(jnp.dot(x, params["w_attn1"], precision=_HP) + params["b_attn1"])
        logits = jnp.sum(h * params["w_attn2"].reshape(1, 1, -1), axis=-1) + params["b_attn2"][0]
        logits = jnp.where(m > 0, logits, -jnp.inf)
        p = jax.nn.softmax(logits, axis=1)
        emb = jnp.sum(x * p[:, :, None], axis=1)
    else:
        raise ValueError(pooling_method)
    if "w_embed" in params:
        emb = jnp.dot(emb, params["w_embed"], precision=_HP) + params["b_embed"]
    if l2norm:
        nrm = jnp.linalg.norm(emb, axis=-1, keepdims=True)
        emb = emb / jnp.maximum(nrm, 1e-12)
    return emb


if __name__ == "__main__":
    # Small deterministic config. Lane-friendly feature dims (multiples of 128).
    B, L = 2, 8
    D_in, D_embed = 256, 128            # dim_input != dim_embed -> ft_embed present
    l2norm = True
    # dropout=0.1 in the module config -> identity at inference.

    key = jax.random.PRNGKey(0)
    ks = jax.random.split(key, 8)
    inputs = jax.random.normal(ks[0], (B, L, D_in), dtype=jnp.float32)
    lengths = jnp.array([5, L], dtype=jnp.int32)
    masks = jnp.arange(L, dtype=jnp.int32)[None, :] < lengths[:, None]   # (B, L) bool

    H = D_in // 2
    params = dict(
        w_embed=jax.random.normal(ks[1], (D_in, D_embed), jnp.float32) * 0.05,
        b_embed=jax.random.normal(ks[2], (D_embed,), jnp.float32) * 0.05,
        w_attn1=jax.random.normal(ks[3], (D_in, H), jnp.float32) * 0.05,
        b_attn1=jax.random.normal(ks[4], (H,), jnp.float32) * 0.05,
        w_attn2=jax.random.normal(ks[5], (1, H), jnp.float32) * 0.05,
        b_attn2=jax.random.normal(ks[6], (1,), jnp.float32) * 0.05,
    )

    ok = True
    # Tolerance covers the bf16-operand MXU matmuls (f32 accumulation) vs the f32 reference.
    atol = rtol = 5e-3
    for pooling in ("first", "avg", "max", "last", "attn"):
        out = text_encoder_forward(inputs, masks, params,
                                   pooling_method=pooling, l2norm=l2norm)
        out = jax.block_until_ready(out)
        ref = _reference(inputs, masks, params, pooling, l2norm)
        assert out.shape == (B, D_embed)
        if not bool(jnp.allclose(out, ref, atol=atol, rtol=rtol)):
            ok = False
            err = float(jnp.max(jnp.abs(out - ref)))
            print(f"MISMATCH pooling={pooling} max_abs_err={err:.3e}")

    if ok:
        print("KERNEL_OK")
</pallas_src>

<mosaic_0001>
module attributes {stable_mosaic.version = 11 : i64} {
  func.func @kernel(%arg0: i32, %arg1: memref<2x8x256xf32, #tpu.memory_space<vmem>>, %arg2: memref<2x8xf32, #tpu.memory_space<vmem>>, %arg3: memref<256x128xbf16, #tpu.memory_space<vmem>>, %arg4: memref<1x128xf32, #tpu.memory_space<vmem>>, %arg5: memref<2x128xf32, #tpu.memory_space<vmem>>) attributes {dimension_semantics = [#tpu.dimension_semantics<parallel>], iteration_bounds = array<i64: 1>, scalar_prefetch = 0 : i64, scratch_operands = 0 : i64, tpu.core_type = #tpu.core_type<tc>, window_params = [{transform_indices = @transform_0, window_bounds = array<i64: 2, 8, 256>}, {transform_indices = @transform_1, window_bounds = array<i64: 2, 8>}, {pipeline_mode = #tpu.pipeline_mode<synchronous>, transform_indices = @transform_2, window_bounds = array<i64: 256, 128>}, {pipeline_mode = #tpu.pipeline_mode<synchronous>, transform_indices = @transform_3, window_bounds = array<i64: 1, 128>}, {transform_indices = @transform_4, window_bounds = array<i64: 2, 128>}]} {
    %c0 = arith.constant 0 : index
    %c0_0 = arith.constant 0 : index
    %c0_1 = arith.constant 0 : index
    %0 = vector.load %arg1[%c0, %c0_0, %c0_1] : memref<2x8x256xf32, #tpu.memory_space<vmem>>, vector<2x8x256xf32>
    %1 = vector.extract_strided_slice %0 {offsets = [0, 0, 0], sizes = [2, 1, 256], strides = [1, 1, 1]} : vector<2x8x256xf32> to vector<2x1x256xf32>
    %2 = vector.shape_cast %1 : vector<2x1x256xf32> to vector<2x256xf32>
    %3 = arith.truncf %2 : vector<2x256xf32> to vector<2x256xbf16>
    %c0_2 = arith.constant 0 : index
    %c0_3 = arith.constant 0 : index
    %4 = vector.load %arg3[%c0_2, %c0_3] : memref<256x128xbf16, #tpu.memory_space<vmem>>, vector<256x128xbf16>
    %cst = arith.constant dense<0.000000e+00> : vector<2x128xf32>
    %5 = tpu.matmul %3, %4, %cst {dimension_numbers = #tpu.dot_dimension_numbers<[1], [0], [0], [1], [0, 0, 1, 1], [], []>} : vector<2x256xbf16>, vector<256x128xbf16>, vector<2x128xf32> -> vector<2x128xf32>
    %c0_4 = arith.constant 0 : index
    %c0_5 = arith.constant 0 : index
    %6 = vector.load %arg4[%c0_4, %c0_5] : memref<1x128xf32, #tpu.memory_space<vmem>>, vector<1x128xf32>
    %7 = vector.broadcast %6 : vector<1x128xf32> to vector<2x128xf32>
    %8 = arith.addf %5, %7 : vector<2x128xf32>
    %9 = arith.mulf %8, %8 : vector<2x128xf32>
    %cst_6 = arith.constant dense<0.000000e+00> : vector<2xf32>
    %10 = vector.multi_reduction <add>, %9, %cst_6 [1] : vector<2x128xf32> to vector<2xf32>
    %11 = vector.shape_cast %10 : vector<2xf32> to vector<2x1xf32>
    %cst_7 = arith.constant 1.000000e-24 : f32
    %12 = vector.broadcast %cst_7 : f32 to vector<2x1xf32>
    %13 = arith.maximumf %11, %12 : vector<2x1xf32>
    %14 = math.rsqrt %13 : vector<2x1xf32>
    %15 = vector.broadcast %14 : vector<2x1xf32> to vector<2x128xf32>
    %16 = arith.mulf %8, %15 : vector<2x128xf32>
    %c0_8 = arith.constant 0 : index
    %c0_9 = arith.constant 0 : index
    %17 = vector.load %arg5[%c0_8, %c0_9] : memref<2x128xf32, #tpu.memory_space<vmem>>, vector<2x128xf32>
    tpu.vector_store %arg5[%c0_8, %c0_9], %16 {strides = array<i32>} : memref<2x128xf32, #tpu.memory_space<vmem>>, vector<2x128xf32>,
    return
  }
  func.func @transform_0(%arg0: i32) -> (i32, i32, i32) {
    %c0_i32 = arith.constant 0 : i32
    %c0_i32_0 = arith.constant 0 : i32
    %c0_i32_1 = arith.constant 0 : i32
    return %arg0, %c0_i32, %c0_i32_0 : i32, i32, i32
  }
  func.func @transform_1(%arg0: i32) -> (i32, i32) {
    %c0_i32 = arith.constant 0 : i32
    %c0_i32_0 = arith.constant 0 : i32
    return %arg0, %c0_i32 : i32, i32
  }
  func.func @transform_2(%arg0: i32) -> (i32, i32) {
    %c0_i32 = arith.constant 0 : i32
    %c0_i32_0 = arith.constant 0 : i32
    %c0_i32_1 = arith.constant 0 : i32
    return %c0_i32, %c0_i32_0 : i32, i32
  }
  func.func @transform_3(%arg0: i32) -> (i32, i32) {
    %c0_i32 = arith.constant 0 : i32
    %c0_i32_0 = arith.constant 0 : i32
    %c0_i32_1 = arith.constant 0 : i32
    return %c0_i32, %c0_i32_0 : i32, i32
  }
  func.func @transform_4(%arg0: i32) -> (i32, i32) {
    %c0_i32 = arith.constant 0 : i32
    %c0_i32_0 = arith.constant 0 : i32
    return %arg0, %c0_i32 : i32, i32
  }
}

</mosaic_0001>

<bundles_post_ra>
// kernel: tpu_custom_call.1
= control target key start
LH: loop header
LB: loop body
LE: loop exit
PB: predicated region body
PF: predicated region fallthrough
CT: control target
= control target key end

     0   :  { %9 = vsyncpa [#allocation3], 0  ;;  %s523_s0 = inlined_call_operand.hbm [shape: f32[2,8,256], index: 0, kind: input, shape index: {}]   ;;  %s524_s1 = inlined_call_operand.hbm [shape: f32[2,8], index: 1, kind: input, shape index: {}]   ;;  %s525_s2 = inlined_call_operand.hbm [shape: bf16[256,128], index: 2, kind: input, shape index: {}]   ;;  %s526_s3 = inlined_call_operand.vmem [shape: f32[1,128], index: 3, kind: input, shape index: {}]   ;;  %s527_s4 = inlined_call_operand.hbm [shape: f32[2,128], index: 4, kind: output, shape index: {}]  }
   0x1   :  { %10 = vsyncpa [#allocation6], 0  ;;  %s30_s17 = sshll.u32 %s524_s1, 4  ;;  %s31_s17 = int_to_ptr.hbm [resolvable:$true] %s30_s17 }
   0x2   :  { %11 = vsyncpa [#allocation4], 0  ;;  %s475_s18 = smov [#allocation5]   ;;  %s16_s22 = sshll.u32 %s523_s0, 4  ;;  %s17_s22 = int_to_ptr.hbm [resolvable:$true] %s16_s22 }
   0x3   :  { %s32_s19 = sshll.u32 %s475_s18, 4  ;;  %s476_s23 = smov [#allocation2]   ;;  %s33_s19 = int_to_ptr.vmem [resolvable:$true] %s32_s19 }
   0x4   :  { %35 = dma.hbm_to_vmem [thread:$0]  %s31_s17, 32, %s33_s19, [#allocation6]  }
   0x5   :  { %s18_s24 = sshll.u32 %s476_s23, 4  ;;  %s477_s25 = smov 256   ;;  %s19_s24 = int_to_ptr.vmem [resolvable:$true] %s18_s24 }
   0x6   :  { %s478_s26 = smov 16   ;;  %s40_s1 = sshll.u32 %s525_s2, 4  ;;  %s41_s1 = int_to_ptr.hbm [resolvable:$true] %s40_s1 }
   0x7   :  { %24 = dma.hbm_to_vmem [thread:$0]  %s17_s22, 512, %s19_s24, [#allocation3], %s477_s25, %s477_s25, %s478_s26  }
   0x8   :  { %s479_s29 = smov [#allocation7]   ;;  %s480_s5 = smov 64  }
   0x9   :  { %s42_s30 = sshll.u32 %s479_s29, 4  ;;  %s481_s6 = smov 4   ;;  %s43_s30 = int_to_ptr.vmem [resolvable:$true] %s42_s30 }
   0xa   :  { %48 = dma.hbm_to_vmem [thread:$0]  %s41_s1, 2048, %s43_s30, [#allocation6], %s480_s5, %s480_s5, %s481_s6  }
   0xb   :  { %469 = dma.done.wait [#allocation3], 512  }
   0xc   :  { %470 = vsyncadd [#allocation3], 4294966784 }
   0xd   :  { %471 = dma.done.wait [#allocation6], 2080  }
   0xe   :  { %472 = vsyncadd [#allocation6], 4294965216  ;;  %v353_v0 = vld [vmem:[#allocation7 + $0x38] sm:$0xff]  ;;  %v352_v2 = vld [vmem:[#allocation7 + $0x30] sm:$0xff]  ;;  %vm116_vm0 = vcmask 1041409   ;;  %vm247_vm1 = vcmask 1041408  }
   0xf   :  { %v361_v1 = vld [vmem:[#allocation7 + $0x78] sm:$0xff]  ;;  %220 = vmatpush.bf16.msra.mxu0 %v353_v0  ;;  %v360_v3 = vld [vmem:[#allocation7 + $0x70] sm:$0xff]  ;;  %v351_v4 = vld [vmem:[#allocation7 + $0x28] sm:$0xff]  ;;  %s271_s10 = sshll.u32 %s527_s4, 4  ;;  %s272_s10 = int_to_ptr.hbm [resolvable:$true] %s271_s10 }
  0x10   :  { %233 = vmatpush.bf16.msra.mxu1 %v361_v1  ;;  %v359_v5 = vld [vmem:[#allocation7 + $0x68] sm:$0xff]  ;;  %v350_v6 = vld [vmem:[#allocation7 + $0x20] sm:$0xff]  ;;  %v66_v9 = vld [vmem:[#allocation2 + $0x18] sm:$0xff] }
  0x11   :  { %v358_v7 = vld [vmem:[#allocation7 + $0x60] sm:$0xff]  ;;  %v65_v8 = vld [vmem:[#allocation2 + $0x10] sm:$0xff]  ;;  %v349_v10 = vld [vmem:[#allocation7 + $0x18] sm:$0xff]  ;;  %v70_v13 = vpack.c.bf16 %v66_v9, %v66_v9 }
  0x12   :  { %v357_v11 = vld [vmem:[#allocation7 + $0x58] sm:$0xff]  ;;  %v69_v12 = vpack.c.bf16 %v65_v8, %v65_v8  ;;  %v64_v15 = vld [vmem:[#allocation2 + $0x8] sm:$0xff]  ;;  %v348_v16 = vld [vmem:[#allocation7 + $0x10] sm:$0xff] }
  0x13   :  { %221 = vmatpush.bf16.msra.mxu0 %v352_v2  ;;  %v63_v14 = vld [vmem:[#allocation2] sm:$0xff]  ;;  %v356_v17 = vld [vmem:[#allocation7 + $0x50] sm:$0xff]  ;;  %v68_v20 = vpack.c.bf16 %v64_v15, %v64_v15  ;;  %v114_v21 = vunpack.c.l.b16 %v70_v13  ;;  %v347_v22 = vld [vmem:[#allocation7 + $0x8] sm:$0xff] }
  0x14   :  { %234 = vmatpush.bf16.msra.mxu1 %v360_v3  ;;  %v67_v18 = vpack.c.bf16 %v63_v14, %v63_v14  ;;  %v113_v19 = vunpack.c.l.b16 %v69_v12  ;;  %v355_v23 = vld [vmem:[#allocation7 + $0x48] sm:$0xff]  ;;  %v346_v28 = vld [vmem:[#allocation7] sm:$0xff]  ;;  %v370_v34 = vld [vmem:[%s526_s3] ss:$0 sm:$0xff]  ;;  %s482_s3 = smov [#allocation8]  }
  0x15   :  { %v112_v26 = vunpack.c.l.b16 %v68_v20  ;;  %v118_v27 = vrot.slane %v114_v21, 7  ;;  %v354_v29 = vld [vmem:[#allocation7 + $0x40] sm:$0xff]  ;;  %s269_s7 = sshll.u32 %s482_s3, 4  ;;  %s270_s7 = int_to_ptr.vmem [resolvable:$true] %s269_s7 }
  0x16   :  { %v111_v24 = vunpack.c.l.b16 %v67_v18  ;;  %v115_v25 = vrot.slane %v113_v19, 7 }
  0x17   :  { %222 = vmatpush.bf16.msra.mxu0 %v351_v4  ;;  %v119_v31 = vsel %vm116_vm0, %v118_v27, %v112_v26 }
  0x18   :  { %235 = vmatpush.bf16.msra.mxu1 %v359_v5  ;;  %v117_v30 = vsel %vm116_vm0, %v115_v25, %v111_v24  ;;  %v121_v33 = vpack.c.b16 %v119_v31, %v119_v31 }
  0x19   :  { %v120_v32 = vpack.c.b16 %v117_v30, %v117_v30 }
  0x1b   :  { %223 = vmatpush.bf16.msra.mxu0 %v350_v6 }
  0x1c   :  { %236 = vmatpush.bf16.msra.mxu1 %v358_v7 }
  0x1f   :  { %224 = vmatpush.bf16.msra.mxu0 %v349_v10 }
  0x20   :  { %237 = vmatpush.bf16.msra.mxu1 %v357_v11 }
  0x23   :  { %225 = vmatpush.bf16.msra.mxu0 %v348_v16 }
  0x24   :  { %238 = vmatpush.bf16.msra.mxu1 %v356_v17 }
  0x27   :  { %226 = vmatpush.bf16.msra.mxu0 %v347_v22 }
  0x28   :  { %239 = vmatpush.bf16.msra.mxu1 %v355_v23 }
  0x2b   :  { %227 = vmatpush.bf16.msra.mxu0 %v346_v28 }
  0x2c   :  { %240 = vmatpush.bf16.msra.mxu1 %v354_v29 }
  0x2e   :  { %228 = vmatmul.bf16.vlgmr.msra.gmra.mxu0 %v120_v32 }
  0x2f   :  { %241 = vmatmul.bf16.vlgmr.msra.gmra.mxu1 %v121_v33 }
  0xab   :  { %v229_v35 = vpop.f32.mrf.mxu0 }
  0xac   :  { %v242_v36 = vpop.f32.mrf.mxu1  ;;  %v230_v37 = vadd.f32 %v370_v34, %v229_v35 }
  0xae   :  { %v243_v38 = vadd.f32 %v242_v36, %v230_v37 }
  0xb0   :  { %v246_v39 = vmul.f32 %v243_v38, %v243_v38 }
  0xb2   :  { %v248_v40 = vsel %vm247_vm1, %v246_v39, 0.0 }
  0xb3   :  { %v231_v41 = vpop.f32.mrf.mxu0  ;;  %249 = vadd.xlane.f32.xlu0 %v248_v40 }
  0xb4   :  { %v244_v42 = vpop.f32.mrf.mxu1 }
 0x126   :  { %v250_v43 = vpop.xlane.xlu0 %249 }
 0x127   :  { %v251_v44 = vmax.f32 %v250_v43, 1e-24 }
 0x129   :  { %371 = vrsqrt.f32 %v251_v44  ;;  %vm258_vm3 = vweird.f32 %v251_v44 }
 0x12f   :  { %v372_v45 = vpop.eup %371 }
 0x130   :  { %v253_v46 = vmul.f32 %v372_v45, %v251_v44  ;;  %vm259_vm2 = vweird.f32 %v372_v45 }
 0x131   :  { %vm260_vm4 = vmor %vm258_vm3, %vm259_vm2 }
 0x132   :  { %v254_v47 = vmul.f32 %v372_v45, %v253_v46 }
 0x134   :  { %v255_v48 = vmul.f32 0.5, %v254_v47 }
 0x136   :  { %v256_v49 = vsub.f32 1.5, %v255_v48 }
 0x138   :  { %v257_v50 = vmul.f32 %v372_v45, %v256_v49 }
 0x13a   :  { %v261_v51 = vsel %vm260_vm4, %v372_v45, %v257_v50 }
 0x13b   :  { %v262_v52 = vmul.f32 %v261_v51, %v243_v38 }
 0x13d   :  { %263 = vst [vmem:[#allocation8] sm:$0x3] %v262_v52 }
 0x13e   :  { %274 = dma.vmem_to_hbm [thread:$0]  %s270_s7, 32, %s272_s10, [#allocation4]  }
 0x13f   :  { %473 = dma.done.wait [#allocation4], 32  }
 0x140   :  { %474 = vsyncadd [#allocation4], 4294967264 }
 0x141   :  { %279 = vsyncpa [#allocation3], 1 }
 0x142   :  { %280 = vsyncpa [#allocation6], 1 }
 0x143   :  { %281 = vsyncpa [#allocation4], 1 }

</bundles_post_ra>
